<compile_context>
chip_gen: v6e
topology: v6e:2x2x1
jax: 0.10.0
libtpu: 0.0.40
codegen_flags: <defaults>
</compile_context>

<pallas_src>
import jax
import jax.numpy as jnp
from jax.experimental import pallas as pl
from jax.experimental.pallas import tpu as pltpu

_MIB = 1024 * 1024
_REAL_PAYLOAD_TARGET = 8 * _MIB   # real HBM bytes per grid step (amortize ~0.35us/step)
_VMEM_MARGIN = 4 * _MIB           # headroom for compiler scratch / semaphores
_SPLIT_MIN_BYTES = 2 * _MIB       # only split a 1-step grid for megacore above this

_VMEM_BUDGET_CACHE = []
_LANE_DENSE_CACHE = {}


def _round_up(x: int, m: int) -> int:
    return ((x + m - 1) // m) * m


def _sublane_multiple(itemsize: int) -> int:
    # VMEM (sublane, lane) tiles: (8,128) f32, (16,128) bf16, (32,128) int8/fp8.
    return max(8, 32 // itemsize)


def _vmem_budget() -> int:
    """Per-kernel VMEM budget: ~3/4 of physical, capped at 96 MiB.
    v5e/v6e (128 MiB) -> 96 MiB, v7x (64 MiB per TensorCore) -> 48 MiB."""
    if not _VMEM_BUDGET_CACHE:
        try:
            cap = int(pltpu.get_tpu_info().vmem_capacity_bytes)
        except Exception:
            cap = 64 * _MIB            # conservative fallback: v7x per-TC VMEM
        _VMEM_BUDGET_CACHE.append(min(cap * 3 // 4, 96 * _MIB))
    return _VMEM_BUDGET_CACHE[0]


def _vmem_limit(in_block_bytes: int, out_block_bytes: int, budget: int) -> int:
    need = 2 * (in_block_bytes + out_block_bytes) + _VMEM_MARGIN
    return int(min(budget, max(need, 32 * _MIB)))


def _finalize_tb(tb: int, m: int, sub: int, real_row_bytes: int,
                 rest_of_grid_is_one: bool) -> int:
    """Clamp the M-axis block; keep >=2 grid steps (v7x megacore) when the
    payload is big enough that the extra ~0.35us step is noise."""
    if tb >= m:
        if (rest_of_grid_is_one and m >= 2 * sub
                and m * real_row_bytes >= _SPLIT_MIN_BYTES):
            return _round_up(pl.cdiv(m, 2), sub)
        return m                       # full-extent block: always legal
    return max(sub, (tb // sub) * sub)


# ----------------------------------------------------------------------------
# Fast path: lane-dense (TB, H*W) block, segmented max via XLU rolls + MXU
# selector compaction.  Used for float inputs with 2 <= W < 128 and H*W % 128
# == 0 (so the rolled lane axis stays vreg-aligned and unpadded).
# ----------------------------------------------------------------------------
def _make_lane_dense_kernel(h: int, w: int, hw: int):
    def kernel(x_ref, o_ref):
        # x_ref: (TB, H*W) lane-dense tile; o_ref: (TB, H).
        acc = x_ref[...]
        # Tree of rolls: after the loop, lane g*w + (w-1) holds the max of
        # group g (pltpu.roll follows jnp.roll semantics: out[k] = in[k-shift];
        # the covered window only ever looks backward within the group, so
        # wraparound never reaches a selected lane).
        covered = 1
        while covered < w:
            s = min(covered, w - covered)
            acc = jnp.maximum(acc, pltpu.roll(acc, s, axis=acc.ndim - 1))
            covered += s
        lane = jax.lax.broadcasted_iota(jnp.int32, acc.shape, acc.ndim - 1)
        keep = (lane % w) == (w - 1)
        # Zero the non-selected lanes first so 0 * (inf/nan leftovers) cannot
        # leak into the selector matmul.
        masked = jnp.where(keep, acc, jnp.zeros_like(acc))
        # Compact (TB, H*W) -> (TB, H) with a constant 0/1 selector on the
        # otherwise-idle MXU.  One nonzero term per output => exact.
        k_idx = jax.lax.broadcasted_iota(jnp.int32, (hw, h), 0)
        g_idx = jax.lax.broadcasted_iota(jnp.int32, (hw, h), 1)
        sel = (k_idx == g_idx * w + (w - 1)).astype(masked.dtype)
        out = jnp.dot(masked, sel,
                      precision=jax.lax.Precision.HIGHEST,
                      preferred_element_type=jnp.float32)
        o_ref[...] = out.astype(o_ref.dtype)
    return kernel


def _hmax_lane_dense_call(x2d: jax.Array, m: int, h: int, w: int) -> jax.Array:
    hw = h * w
    itemsize = jnp.dtype(x2d.dtype).itemsize
    sub = _sublane_multiple(itemsize)
    budget = _vmem_budget()
    per_buf = (budget - _VMEM_MARGIN) // 2          # double-buffered blocks

    row_in = hw * itemsize                          # hw % 128 == 0 -> no lane pad
    row_out = _round_up(h, 128) * itemsize
    tb_vmem = max(1, per_buf // (row_in + row_out))
    tb_target = pl.cdiv(_REAL_PAYLOAD_TARGET, row_in)
    tb = _finalize_tb(max(sub, min(tb_vmem, tb_target)), m, sub, row_in, True)

    grid = (pl.cdiv(m, tb),)
    in_block_bytes = tb * row_in
    out_block_bytes = _round_up(tb, sub) * row_out

    cost = pl.CostEstimate(
        flops=m * hw + 2 * m * hw * h,              # compares + selector matmul
        transcendentals=0,
        bytes_accessed=m * hw * itemsize + m * h * itemsize,
    )
    return pl.pallas_call(
        _make_lane_dense_kernel(h, w, hw),
        out_shape=jax.ShapeDtypeStruct((m, h), x2d.dtype),
        grid_spec=pl.GridSpec(
            grid=grid,
            in_specs=[pl.BlockSpec((tb, hw), lambda i: (i, 0))],
            out_specs=pl.BlockSpec((tb, h), lambda i: (i, 0)),
        ),
        compiler_params=pltpu.CompilerParams(
            dimension_semantics=("parallel",),
            vmem_limit_bytes=_vmem_limit(in_block_bytes, out_block_bytes, budget),
        ),
        cost_estimate=cost,
    )(x2d)


def _use_lane_dense(h: int, w: int, dtype) -> bool:
    dt = jnp.dtype(dtype)
    if not jnp.issubdtype(dt, jnp.floating):
        return False          # selector matmul must be float (v7x MXU has no int path)
    if w < 2 or w >= 128:
        return False          # wide rows are already lane-dense in the (TB,TH,W) path
    if (h * w) % 128 != 0:
        return False          # keep the rolled lane axis vreg-aligned / unpadded
    if h > 128:
        return False          # keep the (H*W, H) selector matmul << DMA cost
    itemsize = dt.itemsize
    sub = _sublane_multiple(itemsize)
    per_buf = (_vmem_budget() - _VMEM_MARGIN) // 2
    if sub * (h * w + _round_up(h, 128)) * itemsize > per_buf:
        return False          # even a single sublane slab would blow the budget
    return True


def _lane_dense_validated(h: int, w: int, dtype) -> bool:
    """One-time feature probe: run the fast path on a tiny input and check it
    against jnp.max.  If roll / HIGHEST-precision matmul lowering ever differs
    on a generation, we silently use the safe (TB, TH, W) path instead."""
    key = (h, w, jnp.dtype(dtype).name)
    cached = _LANE_DENSE_CACHE.get(key)
    if cached is not None:
        return cached
    ok = False
    try:
        m = 8
        probe = jnp.sin(jnp.arange(m * h * w, dtype=jnp.float32))
        probe = probe.reshape(m, h, w).astype(dtype)
        got = _hmax_lane_dense_call(probe.reshape(m, h * w), m, h, w)
        ref = jnp.max(probe.astype(jnp.float32), axis=-1)
        ok = bool(jnp.allclose(got.astype(jnp.float32), ref, rtol=1e-6, atol=1e-6))
    except Exception:
        ok = False
    _LANE_DENSE_CACHE[key] = ok
    return ok


# ----------------------------------------------------------------------------
# Generic path: (TB, TH, W) block, reduce over the (full-extent) W axis.
# Lane-padded for W < 128, but always lowers; H is tiled (multiple of 128)
# only when a single sublane slab of full-H rows would exceed the budget.
# ----------------------------------------------------------------------------
def _hmax_wide_kernel(x_ref, o_ref):
    # x_ref: (TB, TH, W) tile; o_ref: (TB, TH) output slab.
    o_ref[...] = jnp.max(x_ref[...], axis=-1)


def _hmax_wide_call(x3d: jax.Array, m: int, h: int, w: int) -> jax.Array:
    itemsize = jnp.dtype(x3d.dtype).itemsize
    sub = _sublane_multiple(itemsize)
    budget = _vmem_budget()
    per_buf = (budget - _VMEM_MARGIN) // 2
    w_pad = _round_up(w, 128)

    def slab_bytes(th):        # one sublane-multiple slab of M rows (in + out)
        return sub * (_round_up(th, sub) * w_pad + _round_up(th, 128)) * itemsize

    if slab_bytes(h) <= per_buf or h < 256:
        th = h
        # TODO(synk): h < 256 with W so large that one sublane slab exceeds the
        # VMEM budget would need a W-reduction grid axis; not reachable for any
        # realistic HorizontalMaxPool2d feature map.
    else:
        per_h_row = sub * (w_pad + 128) * itemsize
        th = max(128, min((per_buf // per_h_row) // 128, h // 128) * 128)
    num_h = pl.cdiv(h, th)

    row_in = _round_up(th, sub) * w_pad * itemsize   # padded VMEM cost / M row
    row_out = _round_up(th, 128) * itemsize
    row_real = th * w * itemsize                     # real HBM payload / M row
    tb_vmem = max(1, per_buf // (row_in + row_out))
    tb_target = pl.cdiv(_REAL_PAYLOAD_TARGET, row_real)
    tb = _finalize_tb(max(sub, min(tb_vmem, tb_target)), m, sub, row_real,
                      num_h == 1)

    grid = (pl.cdiv(m, tb), num_h)
    in_block_bytes = tb * row_in
    out_block_bytes = _round_up(tb, sub) * row_out

    cost = pl.CostEstimate(
        flops=m * h * w,
        transcendentals=0,
        bytes_accessed=m * h * w * itemsize + m * h * itemsize,
    )
    return pl.pallas_call(
        _hmax_wide_kernel,
        out_shape=jax.ShapeDtypeStruct((m, h), x3d.dtype),
        grid_spec=pl.GridSpec(
            grid=grid,
            in_specs=[pl.BlockSpec((tb, th, w), lambda i, j: (i, j, 0))],
            out_specs=pl.BlockSpec((tb, th), lambda i, j: (i, j)),
        ),
        compiler_params=pltpu.CompilerParams(
            dimension_semantics=("parallel", "parallel"),
            vmem_limit_bytes=_vmem_limit(in_block_bytes, out_block_bytes, budget),
        ),
        cost_estimate=cost,
    )(x3d)


# ----------------------------------------------------------------------------
# Public wrapper: equivalent of nn.functional.max_pool2d(x, (1, W)) for NCHW.
# ----------------------------------------------------------------------------
def horizontal_max_pool2d(x: jax.Array) -> jax.Array:
    n, c, h, w = x.shape
    m = n * c
    if _use_lane_dense(h, w, x.dtype) and _lane_dense_validated(h, w, x.dtype):
        out2d = _hmax_lane_dense_call(x.reshape(m, h * w), m, h, w)
    else:
        out2d = _hmax_wide_call(x.reshape(m, h, w), m, h, w)
    return out2d.reshape(n, c, h, 1)


if __name__ == "__main__":
    key = jax.random.PRNGKey(0)
    # small NCHW input consistent with the module's forward
    x = jax.random.normal(key, (2, 4, 16, 16), dtype=jnp.float32)

    out = horizontal_max_pool2d(x)
    out = jax.block_until_ready(out)

    # sanity check against plain JAX reference
    ref = jnp.max(x, axis=3, keepdims=True)
    assert out.shape == (2, 4, 16, 1), out.shape
    assert jnp.allclose(out, ref), "mismatch vs reference"

    print("KERNEL_OK")
</pallas_src>

<mosaic_0001>
module attributes {stable_mosaic.version = 11 : i64} {
  func.func @kernel(%arg0: i32, %arg1: memref<8x256xf32, #tpu.memory_space<vmem>>, %arg2: memref<8x16xf32, #tpu.memory_space<vmem>>) attributes {dimension_semantics = [#tpu.dimension_semantics<parallel>], iteration_bounds = array<i64: 1>, scalar_prefetch = 0 : i64, scratch_operands = 0 : i64, tpu.core_type = #tpu.core_type<tc>, window_params = [{transform_indices = @transform_0, window_bounds = array<i64: 8, 256>}, {transform_indices = @transform_1, window_bounds = array<i64: 8, 16>}]} {
    %c0 = arith.constant 0 : index
    %c0_0 = arith.constant 0 : index
    %0 = vector.load %arg1[%c0, %c0_0] : memref<8x256xf32, #tpu.memory_space<vmem>>, vector<8x256xf32>
    %c1_i32 = arith.constant 1 : i32
    %1 = tpu.dynamic_rotate %0 by %c1_i32 dim 1 : vector<8x256xf32>, i32 -> vector<8x256xf32>
    %2 = arith.maximumf %0, %1 : vector<8x256xf32>
    %c2_i32 = arith.constant 2 : i32
    %3 = tpu.dynamic_rotate %2 by %c2_i32 dim 1 : vector<8x256xf32>, i32 -> vector<8x256xf32>
    %4 = arith.maximumf %2, %3 : vector<8x256xf32>
    %c4_i32 = arith.constant 4 : i32
    %5 = tpu.dynamic_rotate %4 by %c4_i32 dim 1 : vector<8x256xf32>, i32 -> vector<8x256xf32>
    %6 = arith.maximumf %4, %5 : vector<8x256xf32>
    %c8_i32 = arith.constant 8 : i32
    %7 = tpu.dynamic_rotate %6 by %c8_i32 dim 1 : vector<8x256xf32>, i32 -> vector<8x256xf32>
    %8 = arith.maximumf %6, %7 : vector<8x256xf32>
    %9 = tpu.iota {dimensions = array<i32: 1>} : vector<8x256xi32>
    %c16_i32 = arith.constant 16 : i32
    %c0_i32 = arith.constant 0 : i32
    %10 = arith.cmpi eq, %c16_i32, %c0_i32 : i32
    %c1_i32_1 = arith.constant 1 : i32
    %11 = arith.select %10, %c1_i32_1, %c16_i32 : i32
    %12 = vector.broadcast %11 : i32 to vector<8x256xi32>
    %13 = arith.remsi %9, %12 : vector<8x256xi32>
    %c0_i32_2 = arith.constant 0 : i32
    %14 = vector.broadcast %c0_i32_2 : i32 to vector<8x256xi32>
    %15 = arith.cmpi ne, %13, %14 : vector<8x256xi32>
    %c0_i32_3 = arith.constant 0 : i32
    %16 = vector.broadcast %c0_i32_3 : i32 to vector<8x256xi32>
    %17 = arith.cmpi slt, %13, %16 : vector<8x256xi32>
    %c0_i32_4 = arith.constant 0 : i32
    %18 = arith.cmpi slt, %11, %c0_i32_4 : i32
    %19 = vector.broadcast %18 : i1 to vector<8x256xi1>
    %20 = vector.broadcast %19 : vector<8x256xi1> to vector<8x256xi1>
    %21 = arith.xori %17, %20 : vector<8x256xi1>
    %22 = arith.andi %21, %15 : vector<8x256xi1>
    %23 = vector.broadcast %11 : i32 to vector<8x256xi32>
    %24 = arith.addi %13, %23 : vector<8x256xi32>
    %25 = arith.select %22, %24, %13 : vector<8x256xi1>, vector<8x256xi32>
    %c15_i32 = arith.constant 15 : i32
    %26 = vector.broadcast %c15_i32 : i32 to vector<8x256xi32>
    %27 = arith.cmpi eq, %25, %26 : vector<8x256xi32>
    %cst = arith.constant 0.000000e+00 : f32
    %28 = vector.broadcast %cst : f32 to vector<8x256xf32>
    %29 = arith.select %27, %8, %28 : vector<8x256xi1>, vector<8x256xf32>
    %30 = tpu.iota {dimensions = array<i32: 0>} : vector<256x16xi32>
    %31 = tpu.iota {dimensions = array<i32: 1>} : vector<256x16xi32>
    %c16_i32_5 = arith.constant 16 : i32
    %32 = vector.broadcast %c16_i32_5 : i32 to vector<256x16xi32>
    %33 = arith.muli %31, %32 : vector<256x16xi32>
    %c15_i32_6 = arith.constant 15 : i32
    %34 = vector.broadcast %c15_i32_6 : i32 to vector<256x16xi32>
    %35 = arith.addi %33, %34 : vector<256x16xi32>
    %36 = arith.cmpi eq, %30, %35 : vector<256x16xi32>
    %37 = arith.extui %36 : vector<256x16xi1> to vector<256x16xi32>
    %38 = arith.sitofp %37 : vector<256x16xi32> to vector<256x16xf32>
    %cst_7 = arith.constant dense<0.000000e+00> : vector<8x16xf32>
    %39 = tpu.matmul %29, %38, %cst_7 {dimension_numbers = #tpu.dot_dimension_numbers<[1], [0], [0], [1], [0, 0, 1, 1], [], []>, precision = #tpu.contract_precision<fp32>} : vector<8x256xf32>, vector<256x16xf32>, vector<8x16xf32> -> vector<8x16xf32>
    %c0_8 = arith.constant 0 : index
    %c0_9 = arith.constant 0 : index
    %40 = vector.load %arg2[%c0_8, %c0_9] : memref<8x16xf32, #tpu.memory_space<vmem>>, vector<8x16xf32>
    tpu.vector_store %arg2[%c0_8, %c0_9], %39 {strides = array<i32>} : memref<8x16xf32, #tpu.memory_space<vmem>>, vector<8x16xf32>,
    return
  }
  func.func @transform_0(%arg0: i32) -> (i32, i32) {
    %c0_i32 = arith.constant 0 : i32
    %c0_i32_0 = arith.constant 0 : i32
    return %arg0, %c0_i32 : i32, i32
  }
  func.func @transform_1(%arg0: i32) -> (i32, i32) {
    %c0_i32 = arith.constant 0 : i32
    %c0_i32_0 = arith.constant 0 : i32
    return %arg0, %c0_i32 : i32, i32
  }
}

module attributes {stable_mosaic.version = 11 : i64} {
  func.func @_hmax_wide_kernel(%arg0: i32, %arg1: i32, %arg2: memref<8x16x16xf32, #tpu.memory_space<vmem>>, %arg3: memref<8x16xf32, #tpu.memory_space<vmem>>) attributes {dimension_semantics = [#tpu.dimension_semantics<parallel>, #tpu.dimension_semantics<parallel>], iteration_bounds = array<i64: 1, 1>, scalar_prefetch = 0 : i64, scratch_operands = 0 : i64, tpu.core_type = #tpu.core_type<tc>, window_params = [{transform_indices = @transform_0, window_bounds = array<i64: 8, 16, 16>}, {transform_indices = @transform_1, window_bounds = array<i64: 8, 16>}]} {
    %c0 = arith.constant 0 : index
    %c0_0 = arith.constant 0 : index
    %c0_1 = arith.constant 0 : index
    %0 = vector.load %arg2[%c0, %c0_0, %c0_1] : memref<8x16x16xf32, #tpu.memory_space<vmem>>, vector<8x16x16xf32>
    %cst = arith.constant dense<0xFF800000> : vector<8x16xf32>
    %1 = vector.multi_reduction <maximumf>, %0, %cst [2] : vector<8x16x16xf32> to vector<8x16xf32>
    %c0_2 = arith.constant 0 : index
    %c0_3 = arith.constant 0 : index
    %2 = vector.load %arg3[%c0_2, %c0_3] : memref<8x16xf32, #tpu.memory_space<vmem>>, vector<8x16xf32>
    tpu.vector_store %arg3[%c0_2, %c0_3], %1 {strides = array<i32>} : memref<8x16xf32, #tpu.memory_space<vmem>>, vector<8x16xf32>,
    return
  }
  func.func @transform_0(%arg0: i32, %arg1: i32) -> (i32, i32, i32) {
    %c0_i32 = arith.constant 0 : i32
    %c0_i32_0 = arith.constant 0 : i32
    return %arg0, %arg1, %c0_i32 : i32, i32, i32
  }
  func.func @transform_1(%arg0: i32, %arg1: i32) -> (i32, i32) {
    %c0_i32 = arith.constant 0 : i32
    return %arg0, %arg1 : i32, i32
  }
}

</mosaic_0001>

<bundles_post_ra>
// kernel: tpu_custom_call.1
= control target key start
LH: loop header
LB: loop body
LE: loop exit
PB: predicated region body
PF: predicated region fallthrough
CT: control target
= control target key end

     0   :  { %6 = vsyncpa [#allocation3], 0  ;;  %s2513_s0 = inlined_call_operand.hbm [shape: f32[8,256], index: 0, kind: input, shape index: {}]   ;;  %s2514_s1 = inlined_call_operand.hbm [shape: f32[8,16], index: 1, kind: output, shape index: {}]  }
   0x1   :  { %7 = vsyncpa [#allocation4], 0  ;;  %s1490_s6 = smov [#allocation2]  }
   0x2   :  { %s14_s7 = sshll.u32 %s1490_s6, 4  ;;  %s15_s7 = int_to_ptr.vmem [resolvable:$true] %s14_s7 }
   0x3   :  { %s1454_s8 = scalar_lea.vmem %s15_s7, 256  ;;  %p1459_p1 = scmp.lt.s32.totalorder %s15_s7, %s15_s7 }
   0x4   :  { %p1455_p0 = scmp.ne.s32.totalorder %s15_s7, %s1454_s8  ;;  %p1460_p2 = scmp.lt.s32.totalorder %s1454_s8, %s1454_s8 }
   0x6   :  { %p1461_p3 = por %p1460_p2, %p1459_p1 }
   0x8   :  { %p1462_p4 = pnand %p1461_p3, %p1455_p0 }
   0xa   :  { %1465 = shalt.err (!%p1462_p4)
}
   0xb   :  { %17 = dma.hbm_to_vmem [thread:$0]  %s2513_s0, 256, %s15_s7, [#allocation3]  }
   0xc   :  { %1486 = dma.done.wait [#allocation3], 256  }
   0xd   :  { %1487 = vsyncadd [#allocation3], 4294967040  ;;  %v21_v0 = vld [vmem:[#allocation2] sm:$0xff]  ;;  %s1491_s11 = smov 1   ;;  %v22_v1 = vld [vmem:[#allocation2 + $0x8] sm:$0xff]  ;;  %v27_v2 = vlaneseq  ;;  %s1492_s12 = smov 2  }
   0xe   :  { %23 = vrot.lane.b32.xlu0 %v21_v0, %s1491_s11  ;;  %v2550_v22 = vmov 0.0   ;;  %s1494_s0 = smov 4   ;;  %v2557_v61 = vmov 1.0   ;;  %s1496_s13 = smov 8  }
   0xf   :  { %v1511_v3 = vand.u32 127, %v27_v2  ;;  %v1515_v11 = vshrl.u32 %v27_v2, 7  ;;  %s1497_s14 = smov [#allocation5]  }
  0x10   :  { %s1091_s15 = sshll.u32 %s1497_s14, 4  ;;  %s1092_s15 = int_to_ptr.vmem [resolvable:$true] %s1091_s15 }
  0x11   :  { %vm29_vm0 = vcmp.lt.s32.totalorder %v1511_v3, 1  ;;  %v123_v10 = vmul.u32 16, %v1511_v3  ;;  %2609 = vst [vmem:[#allocation8_spill] sm:$0xff] %v1515_v11  ;;  %vm38_vm1 = vcmp.lt.s32.totalorder %v1511_v3, 2  ;;  %v1521_v13 = vadd.s32 248, %v1515_v11  ;;  %s1466_s16 = scalar_lea.vmem %s1092_s15, 128  ;;  %p1471_p6 = scmp.lt.s32.totalorder %s1092_s15, %s1092_s15 }
  0x12   :  { %25 = vrot.lane.b32.xlu0 %v22_v1, %s1491_s11  ;;  %v1524_v14 = vadd.s32 120, %v1515_v11  ;;  %v1527_v15 = vadd.s32 240, %v1515_v11  ;;  %v1530_v16 = vadd.s32 112, %v1515_v11  ;;  %v1533_v17 = vadd.s32 232, %v1515_v11  ;;  %p1467_p5 = scmp.ne.s32.totalorder %s1092_s15, %s1466_s16  ;;  %p1472_p7 = scmp.lt.s32.totalorder %s1466_s16, %s1466_s16 }
  0x13   :  { %v1517_v12 = vadd.s32 15, %v123_v10  ;;  %v1536_v18 = vadd.s32 104, %v1515_v11  ;;  %v1539_v19 = vadd.s32 224, %v1515_v11  ;;  %v1548_v21 = vadd.s32 96, %v1515_v11 }
  0x14   :  { %v1634_v57 = vadd.s32 216, %v1515_v11  ;;  %v1646_v62 = vadd.s32 88, %v1515_v11  ;;  %p1473_p8 = por %p1472_p7, %p1471_p6 }
  0x15   :  { %vm2601_vm2 = vcmp.eq.s32.totalorder %v1521_v13, %v1517_v12  ;;  %vm140_vm3 = vcmp.eq.s32.totalorder %v1524_v14, %v1517_v12  ;;  %vm155_vm4 = vcmp.eq.s32.totalorder %v1527_v15, %v1517_v12  ;;  %vm139_vm5 = vcmp.eq.s32.totalorder %v1530_v16, %v1517_v12 }
  0x16   :  { %v1131_v23 = vsel %vm2601_vm2, 1.0, %v2550_v22  ;;  %v1115_v24 = vsel %vm140_vm3, 1.0, %v2550_v22  ;;  %v1130_v25 = vsel %vm155_vm4, 1.0, %v2550_v22  ;;  %v1114_v29 = vsel %vm139_vm5, 1.0, %v2550_v22  ;;  %1228 = vmatprep.subr.msk.mxu0 %vm2601_vm2, %v2557_v61  ;;  %p1474_p9 = pnand %p1473_p8, %p1467_p5 }
  0x17   :  { %v1564_v26 = vsub.f32 %v1131_v23, %v1131_v23  ;;  %v1566_v27 = vsub.f32 %v1115_v24, %v1115_v24  ;;  %v1568_v28 = vsub.f32 %v1130_v25, %v1130_v25  ;;  %v1574_v30 = vsub.f32 %v1114_v29, %v1114_v29  ;;  %1229 = vmatpush3.msk.msra.mxu0 %vm140_vm3, %v2557_v61 }
  0x18   :  { %vm154_vm6 = vcmp.eq.s32.totalorder %v1533_v17, %v1517_v12  ;;  %vm138_vm7 = vcmp.eq.s32.totalorder %v1536_v18, %v1517_v12  ;;  %vm153_vm8 = vcmp.eq.s32.totalorder %v1539_v19, %v1517_v12  ;;  %vm137_vm9 = vcmp.eq.s32.totalorder %v1548_v21, %v1517_v12  ;;  %1230 = vmatprep.subr.msk.mxu0 %vm155_vm4, %v2557_v61 }
  0x19   :  { %2610 = vst [vmem:[#allocation9_spill] sm:$0xff] %v1564_v26  ;;  %v2542_v32 = vand.u32 4294901760, %v1564_v26  ;;  %v2541_v33 = vand.u32 4294901760, %v1566_v27  ;;  %v2540_v34 = vand.u32 4294901760, %v1568_v28  ;;  %v1129_v35 = vsel %vm154_vm6, 1.0, %v2550_v22  ;;  %1231 = vmatpush3.msk.msra.mxu0 %vm139_vm5, %v2557_v61 }
  0x1a   :  { %v2539_v38 = vand.u32 4294901760, %v1574_v30  ;;  %v1594_v39 = vsub.f32 %v1129_v35, %v1129_v35  ;;  %v1113_v47 = vsel %vm138_vm7, 1.0, %v2550_v22  ;;  %v1128_v51 = vsel %vm153_vm8, 1.0, %v2550_v22  ;;  %1232 = vmatprep.subr.msk.mxu0 %vm154_vm6, %v2557_v61 }
  0x1b   :  { %v449_v42 = vsub.f32 %v1564_v26, %v2542_v32  ;;  %v337_v43 = vsub.f32 %v1566_v27, %v2541_v33  ;;  %v456_v44 = vsub.f32 %v1568_v28, %v2540_v34  ;;  %v1619_v50 = vsub.f32 %v1113_v47, %v1113_v47  ;;  %1233 = vmatpush3.msk.msra.mxu0 %vm138_vm7, %v2557_v61 }
  0x1c   :  { %v344_v45 = vsub.f32 %v1574_v30, %v2539_v38  ;;  %v2535_v46 = vand.u32 4294901760, %v1594_v39  ;;  %v1628_v55 = vsub.f32 %v1128_v51, %v1128_v51  ;;  %v1112_v60 = vsel %vm137_vm9, 1.0, %v2550_v22  ;;  %1234 = vmatprep.subr.msk.mxu0 %vm153_vm8, %v2557_v61 }
  0x1d   :  { %v450_v48 = vand.u32 4294901760, %v449_v42  ;;  %v338_v49 = vand.u32 4294901760, %v337_v43  ;;  %v457_v52 = vand.u32 4294901760, %v456_v44  ;;  %v2533_v56 = vand.u32 4294901760, %v1619_v50  ;;  %1235 = vmatpush3.msk.msra.mxu0 %vm137_vm9, %v2557_v61 }
  0x1e   :  { %v345_v53 = vand.u32 4294901760, %v344_v45  ;;  %v463_v54 = vsub.f32 %v1594_v39, %v2535_v46  ;;  %v2532_v59 = vand.u32 4294901760, %v1628_v55  ;;  %vm152_vm10 = vcmp.eq.s32.totalorder %v1634_v57, %v1517_v12 }
  0x1f   :  { %1263 = vmatprep.subr.mxu1 %v450_v48  ;;  %v351_v63 = vsub.f32 %v1619_v50, %v2533_v56  ;;  %vm136_vm11 = vcmp.eq.s32.totalorder %v1646_v62, %v1517_v12  ;;  %v1731_v44 = vadd.s32 72, %v1515_v11  ;;  %v1734_v45 = vadd.s32 192, %v1515_v11  ;;  %1236 = vmatprep.subr.msk.mxu0 %vm152_vm10, %v2557_v61 }
  0x20   :  { %1264 = vmatpush3.msra.mxu1 %v338_v49  ;;  %v464_v58 = vand.u32 4294901760, %v463_v54  ;;  %v470_v2 = vsub.f32 %v1628_v55, %v2532_v59  ;;  %1237 = vmatpush3.msk.msra.mxu0 %vm136_vm11, %v2557_v61  ;;  %v2670_v14 = vld [vmem:[#allocation9_spill] sm:$0xff]  ;;  %v2672_v16 = vand.u32 4294901760, %v1566_v27  ;;  %v2673_v17 = vand.u32 4294901760, %v1568_v28 }
  0x21   :  { %1265 = vmatprep.subr.mxu1 %v457_v52  ;;  %vm2516_vm15 = vcmp.eq.s32.totalorder %v1731_v44, %v1517_v12  ;;  %v2671_v15 = vand.u32 4294901760, %v2670_v14  ;;  %v2674_v18 = vand.u32 4294901760, %v1574_v30  ;;  %v2676_v19 = vand.u32 4294901760, %v1594_v39 }
  0x22   :  { %1266 = vmatpush3.msra.mxu1 %v345_v53  ;;  %v471_v10 = vand.u32 4294901760, %v470_v2  ;;  %v2677_v21 = vand.u32 4294901760, %v1619_v50 }
  0x23   :  { %1267 = vmatprep.subr.mxu1 %v464_v58 }
  0x80   :  { %v24_v4 = vpop.permute.xlu0 %23 }
  0x84   :  { %v26_v5 = vpop.permute.xlu0 %25 }
  0x85   :  { %v31_v6 = vsel %vm29_vm0, %v26_v5, %v24_v4  ;;  %v30_v8 = vsel %vm29_vm0, %v24_v4, %v26_v5  ;;  %v1127_v4 = vsel %vm152_vm10, 1.0, %v2550_v22  ;;  %v1676_v5 = vadd.s32 80, %v1515_v11 }
  0x86   :  { %v32_v7 = vmax.f32 %v21_v0, %v31_v6  ;;  %v33_v9 = vmax.f32 %v22_v1, %v30_v8  ;;  %v1651_v0 = vsub.f32 %v1112_v60, %v1112_v60  ;;  %v1660_v1 = vadd.s32 208, %v1515_v11 }
  0x87   :  { %v352_v6 = vand.u32 4294901760, %v351_v63  ;;  %v1679_v8 = vsub.f32 %v1127_v4, %v1127_v4  ;;  %vm2515_vm13 = vcmp.eq.s32.totalorder %v1676_v5, %v1517_v12  ;;  %vm149_vm0 = vcmp.eq.s32.totalorder %v1734_v45, %v1517_v12 }
  0x88   :  { %34 = vrot.lane.b32.xlu1 %v32_v7, %s1492_s12  ;;  %vm151_vm12 = vcmp.eq.s32.totalorder %v1660_v1, %v1517_v12  ;;  %v1110_v29 = vsel %vm2515_vm13, 1.0, %v2550_v22  ;;  %v1109_v63 = vsel %vm2516_vm15, 1.0, %v2550_v22  ;;  %v1124_v2 = vsel %vm149_vm0, 1.0, %v2550_v22 }
  0x89   :  { %1268 = vmatpush3.msra.mxu1 %v352_v6  ;;  %v2528_v24 = vand.u32 4294901760, %v1679_v8  ;;  %v1126_v25 = vsel %vm151_vm12, 1.0, %v2550_v22  ;;  %1238 = vmatprep.subr.msk.mxu0 %vm151_vm12, %v2557_v61  ;;  %v1784_v4 = vadd.s32 64, %v1515_v11  ;;  %v1787_v6 = vadd.s32 184, %v1515_v11 }
  0x8a   :  { %1269 = vmatprep.subr.mxu1 %v471_v10  ;;  %v1716_v35 = vsub.f32 %v1126_v25, %v1126_v25  ;;  %1239 = vmatpush3.msk.msra.mxu0 %vm2515_vm13, %v2557_v61  ;;  %v1794_v25 = vsub.f32 %v1109_v63, %v1109_v63 }
  0x8b   :  { %v477_v43 = vsub.f32 %v1679_v8, %v2528_v24  ;;  %vm2519_vm13 = vcmp.eq.s32.totalorder %v1787_v6, %v1517_v12 }
  0x8c   :  { %36 = vrot.lane.b32.xlu1 %v33_v9, %s1492_s12  ;;  %v2522_v48 = vand.u32 4294901760, %v1716_v35  ;;  %v2692_v62 = vand.u32 4294901760, %v1794_v25 }
  0x8d   :  { %v478_v51 = vand.u32 4294901760, %v477_v43 }
  0x8e   :  { %v484_v54 = vsub.f32 %v1716_v35, %v2522_v48 }
  0xfa   :  { %v35_v20 = vpop.permute.xlu1 %34 }
  0xfe   :  { %v37_v31 = vpop.permute.xlu1 %36 }
  0xff   :  { %v39_v36 = vsel %vm38_vm1, %v35_v20, %v37_v31  ;;  %v40_v37 = vsel %vm38_vm1, %v37_v31, %v35_v20  ;;  %vm2525_vm1 = vcmp.eq.s32.totalorder %v1784_v4, %v1517_v12 }
 0x100   :  { %v1596_v40 = vmax.f32 %v32_v7, %v40_v37  ;;  %v1598_v41 = vmax.f32 %v33_v9, %v39_v36  ;;  %v2529_v7 = vand.u32 4294901760, %v1651_v0  ;;  %v1111_v9 = vsel %vm136_vm11, 1.0, %v2550_v22 }
 0x101   :  { %v1689_v20 = vsub.f32 %v1111_v9, %v1111_v9  ;;  %v1718_v36 = vsub.f32 %v1110_v29, %v1110_v29  ;;  %v1721_v37 = vadd.s32 200, %v1515_v11  ;;  %v485_v9 = vand.u32 4294901760, %v484_v54 }
 0x102   :  { %43 = vrot.lane.b32.xlu0 %v1596_v40, %s1494_s0  ;;  %45 = vrot.lane.b32.xlu1 %v1598_v41, %s1494_s0  ;;  %v358_v23 = vsub.f32 %v1651_v0, %v2529_v7  ;;  %v1800_v29 = vsub.f32 %v1124_v2, %v1124_v2 }
 0x103   :  { %v2523_v31 = vand.u32 4294901760, %v1689_v20  ;;  %v2520_v49 = vand.u32 4294901760, %v1718_v36  ;;  %vm150_vm14 = vcmp.eq.s32.totalorder %v1721_v37, %v1517_v12 }
 0x104   :  { %v359_v42 = vand.u32 4294901760, %v358_v23  ;;  %v1125_v52 = vsel %vm150_vm14, 1.0, %v2550_v22  ;;  %1240 = vmatprep.subr.msk.mxu0 %vm150_vm14, %v2557_v61 }
 0x105   :  { %v365_v47 = vsub.f32 %v1689_v20, %v2523_v31  ;;  %v372_v58 = vsub.f32 %v1718_v36, %v2520_v49  ;;  %v1769_v60 = vsub.f32 %v1125_v52, %v1125_v52  ;;  %1241 = vmatpush3.msk.msra.mxu0 %vm2516_vm15, %v2557_v61  ;;  %v1123_v52 = vsel %vm2519_vm13, 1.0, %v2550_v22 }
 0x106   :  { %1270 = vmatpush3.msra.mxu1 %v359_v42  ;;  %v1807_v42 = vadd.s32 56, %v1515_v11  ;;  %1242 = vmatprep.subr.msk.mxu0 %vm149_vm0, %v2557_v61  ;;  %v1868_v49 = vadd.s32 48, %v1515_v11 }
 0x107   :  { %v366_v53 = vand.u32 4294901760, %v365_v47  ;;  %1271 = vmatprep.subr.mxu1 %v478_v51  ;;  %v373_v10 = vand.u32 4294901760, %v372_v58  ;;  %v2518_v23 = vand.u32 4294901760, %v1769_v60  ;;  %v2517_v47 = vand.u32 4294901760, %v1794_v25  ;;  %1243 = vmatpush3.msk.msra.mxu0 %vm2525_vm1, %v2557_v61 }
 0x108   :  { %v1108_v51 = vsel %vm2525_vm1, 1.0, %v2550_v22  ;;  %v1832_v58 = vsub.f32 %v1123_v52, %v1123_v52  ;;  %vm2524_vm15 = vcmp.eq.s32.totalorder %v1807_v42, %v1517_v12  ;;  %1244 = vmatprep.subr.msk.mxu0 %vm2519_vm13, %v2557_v61  ;;  %v2690_v57 = vand.u32 4294901760, %v1769_v60 }
 0x109   :  { %1272 = vmatpush3.msra.mxu1 %v366_v53  ;;  %v491_v43 = vsub.f32 %v1769_v60, %v2518_v23  ;;  %v2521_v53 = vand.u32 4294901760, %v1800_v29  ;;  %v1830_v54 = vsub.f32 %v1108_v51, %v1108_v51  ;;  %v379_v2 = vsub.f32 %v1794_v25, %v2517_v47  ;;  %1245 = vmatpush3.msk.msra.mxu0 %vm2524_vm15, %v2557_v61 }
 0x10a   :  { %1273 = vmatprep.subr.mxu1 %v485_v9  ;;  %v1107_v9 = vsel %vm2524_vm15, 1.0, %v2550_v22  ;;  %v2526_v52 = vand.u32 4294901760, %v1832_v58  ;;  %vm2537_vm15 = vcmp.eq.s32.totalorder %v1868_v49, %v1517_v12 }
 0x10b   :  { %1274 = vmatpush3.msra.mxu1 %v373_v10  ;;  %v492_v63 = vand.u32 4294901760, %v491_v43  ;;  %v1848_v10 = vadd.s32 176, %v1515_v11  ;;  %v498_v43 = vsub.f32 %v1800_v29, %v2521_v53  ;;  %v2527_v51 = vand.u32 4294901760, %v1830_v54 }
 0x10c   :  { %v1859_v47 = vsub.f32 %v1107_v9, %v1107_v9  ;;  %v380_v23 = vand.u32 4294901760, %v379_v2  ;;  %v1871_v53 = vadd.s32 168, %v1515_v11  ;;  %v505_v31 = vsub.f32 %v1832_v58, %v2526_v52 }
 0x10d   :  { %1275 = vmatprep.subr.mxu1 %v492_v63  ;;  %vm2530_vm13 = vcmp.eq.s32.totalorder %v1848_v10, %v1517_v12  ;;  %v499_v48 = vand.u32 4294901760, %v498_v43  ;;  %v386_v9 = vsub.f32 %v1830_v54, %v2527_v51  ;;  %v1893_v43 = vadd.s32 40, %v1515_v11 }
 0x10e   :  { %2611 = vst [vmem:[#allocation10_spill] sm:$0xff] %v1859_v47  ;;  %v2531_v63 = vand.u32 4294901760, %v1859_v47  ;;  %1246 = vmatprep.subr.msk.mxu0 %vm2530_vm13, %v2557_v61  ;;  %1276 = vmatpush3.msra.mxu1 %v380_v23  ;;  %v1122_v2 = vsel %vm2530_vm13, 1.0, %v2550_v22  ;;  %vm2534_vm1 = vcmp.eq.s32.totalorder %v1871_v53, %v1517_v12  ;;  %v506_v51 = vand.u32 4294901760, %v505_v31 }
 0x10f   :  { %1277 = vmatprep.subr.mxu1 %v499_v48  ;;  %v387_v52 = vand.u32 4294901760, %v386_v9  ;;  %v1898_v24 = vsub.f32 %v1122_v2, %v1122_v2  ;;  %1247 = vmatpush3.msk.msra.mxu0 %vm2537_vm15, %v2557_v61  ;;  %v1106_v7 = vsel %vm2537_vm15, 1.0, %v2550_v22  ;;  %v1121_v31 = vsel %vm2534_vm1, 1.0, %v2550_v22 }
 0x110   :  { %v393_v23 = vsub.f32 %v1859_v47, %v2531_v63  ;;  %vm2536_vm13 = vcmp.eq.s32.totalorder %v1893_v43, %v1517_v12  ;;  %v1915_v48 = vadd.s32 160, %v1515_v11  ;;  %1248 = vmatprep.subr.msk.mxu0 %vm2534_vm1, %v2557_v61  ;;  %v1922_v63 = vsub.f32 %v1106_v7, %v1106_v7 }
 0x111   :  { %2612 = vst [vmem:[#allocation11_spill] sm:$0xff] %v1898_v24  ;;  %1278 = vmatpush3.msra.mxu1 %v387_v52  ;;  %v2538_v2 = vand.u32 4294901760, %v1898_v24  ;;  %v1924_v59 = vsub.f32 %v1121_v31, %v1121_v31  ;;  %1249 = vmatpush3.msk.msra.mxu0 %vm2536_vm13, %v2557_v61  ;;  %v1105_v56 = vsel %vm2536_vm13, 1.0, %v2550_v22  ;;  %v1937_v52 = vadd.s32 32, %v1515_v11 }
 0x112   :  { %v394_v9 = vand.u32 4294901760, %v393_v23  ;;  %2613 = vst [vmem:[#allocation12_spill] sm:$0xff] %v1922_v63  ;;  %1279 = vmatprep.subr.mxu1 %v506_v51  ;;  %vm2544_vm1 = vcmp.eq.s32.totalorder %v1915_v48, %v1517_v12  ;;  %v1940_v7 = vadd.s32 152, %v1515_v11  ;;  %v2543_v51 = vand.u32 4294901760, %v1922_v63 }
 0x113   :  { %2614 = vst [vmem:[#allocation13_spill] sm:$0xff] %v1924_v59  ;;  %v512_v23 = vsub.f32 %v1898_v24, %v2538_v2  ;;  %v2545_v31 = vand.u32 4294901760, %v1924_v59  ;;  %v1947_v46 = vsub.f32 %v1105_v56, %v1105_v56  ;;  %1250 = vmatprep.subr.msk.mxu0 %vm2544_vm1, %v2557_v61  ;;  %vm2565_vm13 = vcmp.eq.s32.totalorder %v1937_v52, %v1517_v12 }
 0x114   :  { %1280 = vmatpush3.msra.mxu1 %v394_v9  ;;  %v1120_v9 = vsel %vm2544_vm1, 1.0, %v2550_v22  ;;  %vm2564_vm15 = vcmp.eq.s32.totalorder %v1940_v7, %v1517_v12  ;;  %v1962_v2 = vadd.s32 24, %v1515_v11  ;;  %v400_v38 = vsub.f32 %v1922_v63, %v2543_v51  ;;  %1251 = vmatpush3.msk.msra.mxu0 %vm2565_vm13, %v2557_v61 }
 0x115   :  { %2615 = vst [vmem:[#allocation14_spill] sm:$0xff] %v1947_v46  ;;  %v513_v56 = vand.u32 4294901760, %v512_v23  ;;  %v519_v34 = vsub.f32 %v1924_v59, %v2545_v31  ;;  %v2556_v33 = vand.u32 4294901760, %v1947_v46  ;;  %v1975_v32 = vsub.f32 %v1120_v9, %v1120_v9  ;;  %1252 = vmatprep.subr.msk.mxu0 %vm2564_vm15, %v2557_v61 }
 0x116   :  { %v1104_v23 = vsel %vm2565_vm13, 1.0, %v2550_v22  ;;  %v1119_v51 = vsel %vm2564_vm15, 1.0, %v2550_v22  ;;  %vm2563_vm1 = vcmp.eq.s32.totalorder %v1962_v2, %v1517_v12  ;;  %v401_v9 = vand.u32 4294901760, %v400_v38 }
 0x117   :  { %2616 = vst [vmem:[#allocation15_spill] sm:$0xff] %v1975_v32  ;;  %1281 = vmatprep.subr.mxu1 %v513_v56  ;;  %v520_v31 = vand.u32 4294901760, %v519_v34  ;;  %v407_v59 = vsub.f32 %v1947_v46, %v2556_v33  ;;  %v1994_v63 = vsub.f32 %v1104_v23, %v1104_v23  ;;  %1253 = vmatpush3.msk.msra.mxu0 %vm2563_vm1, %v2557_v61  ;;  %v2561_v22 = vand.u32 4294901760, %v1975_v32 }
 0x118   :  { %v2001_v24 = vsub.f32 %v1119_v51, %v1119_v51  ;;  %v2619_v47 = vmov 0.0   ;;  %1282 = vmatpush3.msra.mxu1 %v401_v9  ;;  %v2696_v1 = vand.u32 4294901760, %v1830_v54 }
 0x119   :  { %2617 = vst [vmem:[#allocation16_spill] sm:$0xff] %v1994_v63  ;;  %v1103_v34 = vsel %vm2563_vm1, 1.0, %v2619_v47  ;;  %v408_v38 = vand.u32 4294901760, %v407_v59  ;;  %v2562_v56 = vand.u32 4294901760, %v1994_v63  ;;  %1283 = vmatprep.subr.mxu1 %v520_v31  ;;  %v526_v33 = vsub.f32 %v1975_v32, %v2561_v22 }
 0x11a   :  { %2618 = vst [vmem:[#allocation17_spill] sm:$0xff] %v2001_v24  ;;  %v2008_v23 = vsub.f32 %v1103_v34, %v1103_v34  ;;  %v2568_v61 = vand.u32 4294901760, %v2001_v24 }
 0x11b   :  { %1284 = vmatpush3.msra.mxu1 %v408_v38  ;;  %v414_v51 = vsub.f32 %v1994_v63, %v2562_v56  ;;  %v527_v9 = vand.u32 4294901760, %v526_v33  ;;  %v2025_v56 = vadd.s32 144, %v1515_v11  ;;  %v2028_v33 = vadd.s32 16, %v1515_v11 }
 0x11c   :  { %2620 = vst [vmem:[#allocation18_spill] sm:$0xff] %v2008_v23  ;;  %v2566_v46 = vand.u32 4294901760, %v2008_v23  ;;  %v533_v59 = vsub.f32 %v2001_v24, %v2568_v61 }
 0x11d   :  { %v415_v34 = vand.u32 4294901760, %v414_v51  ;;  %1285 = vmatprep.subr.mxu1 %v527_v9  ;;  %2621 = vst [vmem:[#allocation19_spill] sm:$0xff] %v2025_v56  ;;  %2622 = vst [vmem:[#allocation20_spill] sm:$0xff] %v2028_v33  ;;  %vm2567_vm1 = vcmp.eq.s32.totalorder %v2025_v56, %v1517_v12  ;;  %v2033_v51 = vadd.s32 136, %v1515_v11  ;;  %vm2571_vm15 = vcmp.eq.s32.totalorder %v2028_v33, %v1517_v12 }
 0x11e   :  { %v421_v31 = vsub.f32 %v2008_v23, %v2566_v46  ;;  %v534_v22 = vand.u32 4294901760, %v533_v59  ;;  %v1118_v9 = vsel %vm2567_vm1, 1.0, %v2619_v47  ;;  %v2625_v59 = vmov 1.0  }
 0x11f   :  { %1286 = vmatpush3.msra.mxu1 %v415_v34  ;;  %2623 = vst [vmem:[#allocation21_spill] sm:$0xff] %v2033_v51  ;;  %1254 = vmatprep.subr.msk.mxu0 %vm2567_vm1, %v2625_v59  ;;  %v2048_v34 = vsub.f32 %v1118_v9, %v1118_v9  ;;  %vm2576_vm13 = vcmp.eq.s32.totalorder %v2033_v51, %v1517_v12 }
 0x120   :  { %v422_v38 = vand.u32 4294901760, %v421_v31  ;;  %1287 = vmatprep.subr.mxu1 %v534_v22  ;;  %v2042_v22 = vadd.s32 8, %v1515_v11  ;;  %v1102_v31 = vsel %vm2571_vm15, 1.0, %v2619_v47  ;;  %1255 = vmatpush3.msk.msra.mxu0 %vm2571_vm15, %v2625_v59  ;;  %v1117_v9 = vsel %vm2576_vm13, 1.0, %v2619_v47 }
 0x121   :  { %2626 = vst [vmem:[#allocation23_spill] sm:$0xff] %v2048_v34  ;;  %v2063_v46 = vsub.f32 %v1102_v31, %v1102_v31  ;;  %1256 = vmatprep.subr.msk.mxu0 %vm2576_vm13, %v2625_v59  ;;  %v2585_v61 = vand.u32 4294901760, %v2048_v34  ;;  %v2076_v23 = vsub.f32 %v1117_v9, %v1117_v9  ;;  %vm2598_vm13 = vcmp.eq.s32.totalorder %v1515_v11, %v1517_v12 }
 0x122   :  { %1288 = vmatpush3.msra.mxu1 %v422_v38  ;;  %2624 = vst [vmem:[#allocation22_spill] sm:$0xff] %v2042_v22  ;;  %v2057_v38 = vadd.s32 128, %v1515_v11  ;;  %vm2602_vm1 = vcmp.eq.s32.totalorder %v2042_v22, %v1517_v12  ;;  %v1100_v22 = vsel %vm2598_vm13, 1.0, %v2619_v47 }
 0x123   :  { %2628 = vst [vmem:[#allocation25_spill] sm:$0xff] %v2063_v46  ;;  %v1101_v31 = vsel %vm2602_vm1, 1.0, %v2619_v47  ;;  %1257 = vmatpush3.msk.msra.mxu0 %vm2602_vm1, %v2625_v59  ;;  %v540_v32 = vsub.f32 %v2048_v34, %v2585_v61  ;;  %v2119_v34 = vsub.f32 %v1100_v22, %v1100_v22 }
 0x124   :  { %2627 = vst [vmem:[#allocation24_spill] sm:$0xff] %v2057_v38  ;;  %vm2599_vm15 = vcmp.eq.s32.totalorder %v2057_v38, %v1517_v12  ;;  %v2089_v63 = vsub.f32 %v1101_v31, %v1101_v31  ;;  %v2597_v31 = vand.u32 4294901760, %v2076_v23  ;;  %v2629_v38 = vand.u32 4294901760, %v2063_v46 }
 0x125   :  { %v1116_v9 = vsel %vm2599_vm15, 1.0, %v2619_v47  ;;  %1258 = vmatprep.subr.msk.mxu0 %vm2599_vm15, %v2625_v59  ;;  %2630 = vst [vmem:[#allocation26_spill] sm:$0xff] %v2119_v34  ;;  %vm56_vm15 = vcmp.lt.s32.totalorder %v1511_v3, 8 }
 0x126   :  { %v2105_v24 = vsub.f32 %v1116_v9, %v1116_v9  ;;  %1259 = vmatpush3.msk.msra.mxu0 %vm2598_vm13, %v2625_v59  ;;  %v428_v51 = vsub.f32 %v2063_v46, %v2629_v38  ;;  %v2604_v61 = vand.u32 4294901760, %v2089_v63  ;;  %v541_v9 = vand.u32 4294901760, %v540_v32 }
 0x127   :  { %1298 = vmatprep.subr.mxu0 %v1564_v26  ;;  %v547_v47 = vsub.f32 %v2076_v23, %v2597_v31  ;;  %v2600_v26 = vand.u32 4294901760, %v2119_v34  ;;  %vm47_vm13 = vcmp.lt.s32.totalorder %v1511_v3, 4 }
 0x128   :  { %v2603_v33 = vand.u32 4294901760, %v2105_v24  ;;  %v429_v56 = vand.u32 4294901760, %v428_v51  ;;  %v435_v11 = vsub.f32 %v2089_v63, %v2604_v61  ;;  %1289 = vmatprep.subr.mxu1 %v541_v9 }
 0x129   :  { %v548_v38 = vand.u32 4294901760, %v547_v47  ;;  %v442_v51 = vsub.f32 %v2119_v34, %v2600_v26 }
 0x12a   :  { %v554_v22 = vsub.f32 %v2105_v24, %v2603_v33  ;;  %1290 = vmatpush3.msra.mxu1 %v429_v56  ;;  %v436_v32 = vand.u32 4294901760, %v435_v11 }
 0x12b   :  { %1291 = vmatprep.subr.mxu1 %v548_v38  ;;  %v443_v31 = vand.u32 4294901760, %v442_v51 }
 0x12c   :  { %v555_v46 = vand.u32 4294901760, %v554_v22  ;;  %1292 = vmatpush3.msra.mxu1 %v436_v32 }
 0x12e   :  { %1293 = vmatprep.subr.mxu1 %v555_v46  ;;  %v61_v46 = vadd.s32 128, %v1511_v3 }
 0x12f   :  { %1294 = vmatpush3.msra.mxu1 %v443_v31  ;;  %v66_v31 = vand.u32 15, %v1511_v3 }
 0x130   :  { %1333 = vmatprep.subr.msk.mxu1 %vm2601_vm2, %v2625_v59  ;;  %v73_v32 = vand.u32 15, %v61_v46 }
 0x131   :  { %vm86_vm2 = vcmp.eq.s32.totalorder %v66_v31, 15 }
 0x132   :  { %vm87_vm1 = vcmp.eq.s32.totalorder %v73_v32, 15  ;;  %v2646_v32 = vld [vmem:[#allocation11_spill] sm:$0xff] }
 0x174   :  { %v44_v9 = vpop.permute.xlu0 %43  ;;  %v46_v56 = vpop.permute.xlu1 %45 }
 0x175   :  { %v48_v11 = vsel %vm47_vm13, %v44_v9, %v46_v56  ;;  %v49_v47 = vsel %vm47_vm13, %v46_v56, %v44_v9  ;;  %vm2633_vm13 = vcmp.eq.s32.totalorder %v1731_v44, %v1517_v12 }
 0x176   :  { %v50_v38 = vmax.f32 %v1596_v40, %v49_v47  ;;  %v51_v22 = vmax.f32 %v1598_v41, %v48_v11 }
 0x178   :  { %52 = vrot.lane.b32.xlu0 %v50_v38, %s1496_s13  ;;  %54 = vrot.lane.b32.xlu1 %v51_v22, %s1496_s13 }
 0x1ea   :  { %v53_v51 = vpop.permute.xlu0 %52  ;;  %v55_v26 = vpop.permute.xlu1 %54 }
 0x1eb   :  { %v57_v33 = vsel %vm56_vm15, %v53_v51, %v55_v26  ;;  %v58_v9 = vsel %vm56_vm15, %v55_v26, %v53_v51  ;;  %vm2634_vm15 = vcmp.eq.s32.totalorder %v1784_v4, %v1517_v12  ;;  %v2647_v51 = vld [vmem:[#allocation19_spill] sm:$0xff] }
 0x1ec   :  { %v59_v56 = vmax.f32 %v50_v38, %v58_v9  ;;  %v60_v40 = vmax.f32 %v51_v22, %v57_v33  ;;  %v2649_v9 = vld [vmem:[#allocation12_spill] sm:$0xff] }
 0x1ee   :  { %v88_v47 = vsel %vm86_vm2, %v59_v56, 0.0  ;;  %v89_v41 = vsel %vm87_vm1, %v60_v40, 0.0  ;;  %vm2632_vm2 = vcmp.eq.s32.totalorder %v1676_v5, %v1517_v12  ;;  %vm2635_vm1 = vcmp.eq.s32.totalorder %v1787_v6, %v1517_v12  ;;  %v2650_v56 = vld [vmem:[#allocation20_spill] sm:$0xff]  ;;  %v2652_v40 = vld [vmem:[#allocation13_spill] sm:$0xff] }
 0x1ef   :  { %v2146_v11 = vand.u32 4294901760, %v89_v41  ;;  %v2148_v61 = vand.u32 4294901760, %v88_v47 }
 0x1f1   :  { %2631 = vst [vmem:[#allocation27_spill] sm:$0xff] %v2148_v61  ;;  %v318_v34 = vsub.f32 %v89_v41, %v2146_v11  ;;  %v2152_v46 = vsub.f32 %v88_v47, %v2148_v61  ;;  %558 = vmatprep.mubr.f32.mxu1 %v2146_v11  ;;  %v2653_v47 = vld [vmem:[#allocation21_spill] sm:$0xff]  ;;  %v2655_v41 = vld [vmem:[#allocation14_spill] sm:$0xff] }
 0x1f2   :  { %560 = vmatmul.mubr.f32.vlgmr.msra.gmra.mxu1 %v2148_v61  ;;  %v2664_v61 = vld [vmem:[#allocation17_spill] sm:$0xff]  ;;  %v2708_v37 = vand.u32 4294901760, %v2655_v41 }
 0x1f3   :  { %1334 = vmatpush3.msk.msra.mxu1 %vm140_vm3, %v2625_v59  ;;  %v319_v3 = vand.u32 4294901760, %v318_v34  ;;  %v325_v26 = vand.u32 4294901760, %v2152_v46 }
 0x1f4   :  { %1335 = vmatprep.subr.msk.mxu1 %vm155_vm4, %v2625_v59 }
 0x1f5   :  { %1336 = vmatpush3.msk.msra.mxu1 %vm139_vm5, %v2625_v59  ;;  %802 = vmatprep.mubr.f32.mxu1 %v319_v3  ;;  %v320_v33 = vsub.f32 %v318_v34, %v319_v3  ;;  %v326_v38 = vsub.f32 %v2152_v46, %v325_v26  ;;  %v2656_v3 = vld [vmem:[#allocation22_spill] sm:$0xff] }
 0x1f6   :  { %1337 = vmatprep.subr.msk.mxu1 %vm154_vm6, %v2625_v59 }
 0x1f7   :  { %1338 = vmatpush3.msk.msra.mxu1 %vm138_vm7, %v2625_v59  ;;  %v321_v22 = vand.u32 4294901760, %v320_v33  ;;  %v327_v31 = vand.u32 4294901760, %v326_v38  ;;  %v2658_v33 = vld [vmem:[#allocation15_spill] sm:$0xff]  ;;  %v2659_v38 = vld [vmem:[#allocation24_spill] sm:$0xff] }
 0x1f8   :  { %1339 = vmatprep.subr.msk.mxu1 %vm153_vm8, %v2625_v59 }
 0x1f9   :  { %1340 = vmatpush3.msk.msra.mxu1 %vm137_vm9, %v2625_v59  ;;  %322 = vmatprep.mubr.f32.mxu0 %v321_v22  ;;  %v2661_v22 = vld [vmem:[#allocation16_spill] sm:$0xff] }
 0x1fa   :  { %1341 = vmatprep.subr.msk.mxu1 %vm152_vm10, %v2625_v59  ;;  %328 = vmatmul.mubr.f32.vlgmr.msra.gmra.mxu0 %v327_v31  ;;  %v2662_v31 = vld [vmem:[#allocation8_spill] sm:$0xff] }
 0x1fb   :  { %1299 = vmatpush3.msra.mxu0 %v1566_v27  ;;  %1342 = vmatpush3.msk.msra.mxu1 %vm136_vm11, %v2625_v59  ;;  %v2679_v27 = vand.u32 4294901760, %v1628_v55 }
 0x1fc   :  { %1300 = vmatprep.subr.mxu0 %v1568_v28  ;;  %695 = vmatprep.mubr.f32.mxu0 %v318_v34  ;;  %v2644_v34 = vld [vmem:[#allocation10_spill] sm:$0xff]  ;;  %v2680_v28 = vand.u32 4294901760, %v1651_v0 }
 0x1fd   :  { %1343 = vmatprep.subr.msk.mxu1 %vm151_vm12, %v2625_v59  ;;  %1301 = vmatpush3.msra.mxu0 %v1574_v30  ;;  %v2682_v30 = vand.u32 4294901760, %v1679_v8 }
 0x1fe   :  { %1344 = vmatpush3.msk.msra.mxu1 %vm2632_vm2, %v2625_v59  ;;  %1302 = vmatprep.subr.mxu0 %v1594_v39  ;;  %vm2636_vm2 = vcmp.eq.s32.totalorder %v1807_v42, %v1517_v12  ;;  %v2684_v39 = vand.u32 4294901760, %v1689_v20 }
 0x1ff   :  { %1345 = vmatprep.subr.msk.mxu1 %vm150_vm14, %v2625_v59  ;;  %1303 = vmatpush3.msra.mxu0 %v1619_v50  ;;  %v2686_v50 = vand.u32 4294901760, %v1716_v35 }
 0x200   :  { %1346 = vmatpush3.msk.msra.mxu1 %vm2633_vm13, %v2625_v59  ;;  %1304 = vmatprep.subr.mxu0 %v1628_v55  ;;  %vm2637_vm13 = vcmp.eq.s32.totalorder %v1848_v10, %v1517_v12  ;;  %v2688_v55 = vand.u32 4294901760, %v1718_v36 }
 0x201   :  { %1347 = vmatprep.subr.msk.mxu1 %vm149_vm0, %v2625_v59  ;;  %1305 = vmatpush3.msra.mxu0 %v1651_v0  ;;  %v2694_v0 = vand.u32 4294901760, %v1800_v29 }
 0x202   :  { %1348 = vmatpush3.msk.msra.mxu1 %vm2634_vm15, %v2625_v59  ;;  %1306 = vmatprep.subr.mxu0 %v1679_v8  ;;  %vm2638_vm15 = vcmp.eq.s32.totalorder %v1868_v49, %v1517_v12  ;;  %v2700_v8 = vand.u32 4294901760, %v2644_v34 }
 0x203   :  { %1349 = vmatprep.subr.msk.mxu1 %vm2635_vm1, %v2625_v59  ;;  %1307 = vmatpush3.msra.mxu0 %v1689_v20  ;;  %vm2639_vm1 = vcmp.eq.s32.totalorder %v1871_v53, %v1517_v12  ;;  %v2702_v20 = vand.u32 4294901760, %v2646_v32 }
 0x204   :  { %1350 = vmatpush3.msk.msra.mxu1 %vm2636_vm2, %v2625_v59  ;;  %1308 = vmatprep.subr.mxu0 %v1716_v35  ;;  %vm2640_vm2 = vcmp.eq.s32.totalorder %v1893_v43, %v1517_v12  ;;  %v2704_v35 = vand.u32 4294901760, %v2649_v9 }
 0x205   :  { %1351 = vmatprep.subr.msk.mxu1 %vm2637_vm13, %v2625_v59  ;;  %1309 = vmatpush3.msra.mxu0 %v1718_v36  ;;  %vm2641_vm13 = vcmp.eq.s32.totalorder %v1915_v48, %v1517_v12  ;;  %v2706_v36 = vand.u32 4294901760, %v2652_v40 }
 0x206   :  { %1352 = vmatpush3.msk.msra.mxu1 %vm2638_vm15, %v2625_v59  ;;  %1310 = vmatprep.subr.mxu0 %v1769_v60  ;;  %vm2642_vm15 = vcmp.eq.s32.totalorder %v1937_v52, %v1517_v12 }
 0x207   :  { %1353 = vmatprep.subr.msk.mxu1 %vm2639_vm1, %v2625_v59  ;;  %1311 = vmatpush3.msra.mxu0 %v1794_v25  ;;  %vm2643_vm1 = vcmp.eq.s32.totalorder %v1940_v7, %v1517_v12 }
 0x208   :  { %1354 = vmatpush3.msk.msra.mxu1 %vm2640_vm2, %v2625_v59  ;;  %1312 = vmatprep.subr.mxu0 %v1800_v29  ;;  %vm2645_vm2 = vcmp.eq.s32.totalorder %v1962_v2, %v1517_v12 }
 0x209   :  { %1355 = vmatprep.subr.msk.mxu1 %vm2641_vm13, %v2625_v59  ;;  %1313 = vmatpush3.msra.mxu0 %v1830_v54  ;;  %vm2648_vm13 = vcmp.eq.s32.totalorder %v2647_v51, %v1517_v12 }
 0x20a   :  { %1356 = vmatpush3.msk.msra.mxu1 %vm2642_vm15, %v2625_v59  ;;  %1314 = vmatprep.subr.mxu0 %v1832_v58  ;;  %vm2651_vm15 = vcmp.eq.s32.totalorder %v2650_v56, %v1517_v12 }
 0x20b   :  { %1357 = vmatprep.subr.msk.mxu1 %vm2643_vm1, %v2625_v59  ;;  %1315 = vmatpush3.msra.mxu0 %v2644_v34  ;;  %vm2654_vm1 = vcmp.eq.s32.totalorder %v2653_v47, %v1517_v12 }
 0x20c   :  { %1358 = vmatpush3.msk.msra.mxu1 %vm2645_vm2, %v2625_v59  ;;  %1316 = vmatprep.subr.mxu0 %v2646_v32  ;;  %vm2657_vm2 = vcmp.eq.s32.totalorder %v2656_v3, %v1517_v12 }
 0x20d   :  { %1359 = vmatprep.subr.msk.mxu1 %vm2648_vm13, %v2625_v59  ;;  %1317 = vmatpush3.msra.mxu0 %v2649_v9  ;;  %vm2660_vm13 = vcmp.eq.s32.totalorder %v2659_v38, %v1517_v12 }
 0x20e   :  { %1360 = vmatpush3.msk.msra.mxu1 %vm2651_vm15, %v2625_v59  ;;  %1318 = vmatprep.subr.mxu0 %v2652_v40  ;;  %vm2663_vm15 = vcmp.eq.s32.totalorder %v2662_v31, %v1517_v12 }
 0x20f   :  { %1361 = vmatprep.subr.msk.mxu1 %vm2654_vm1, %v2625_v59  ;;  %1319 = vmatpush3.msra.mxu0 %v2655_v41  ;;  %vm2665_vm1 = vcmp.eq.s32.totalorder %v1521_v13, %v1517_v12  ;;  %v2669_v13 = vld [vmem:[#allocation26_spill] sm:$0xff] }
 0x210   :  { %1362 = vmatpush3.msk.msra.mxu1 %vm2657_vm2, %v2625_v59  ;;  %1320 = vmatprep.subr.mxu0 %v2658_v33  ;;  %v2666_v33 = vld [vmem:[#allocation18_spill] sm:$0xff]  ;;  %vm2701_vm2 = vcmp.eq.s32.totalorder %v1962_v2, %v1517_v12  ;;  %v2724_v54 = vand.u32 4294901760, %v2669_v13 }
 0x211   :  { %1363 = vmatprep.subr.msk.mxu1 %vm2660_vm13, %v2625_v59  ;;  %1321 = vmatpush3.msra.mxu0 %v2661_v22  ;;  %v2667_v22 = vld [vmem:[#allocation23_spill] sm:$0xff]  ;;  %vm2703_vm13 = vcmp.eq.s32.totalorder %v2647_v51, %v1517_v12  ;;  %v2718_v25 = vand.u32 4294901760, %v2666_v33 }
 0x212   :  { %1364 = vmatpush3.msk.msra.mxu1 %vm2663_vm15, %v2625_v59  ;;  %1322 = vmatprep.subr.mxu0 %v2664_v61  ;;  %vm2705_vm15 = vcmp.eq.s32.totalorder %v2650_v56, %v1517_v12  ;;  %v2719_v29 = vand.u32 4294901760, %v2667_v22 }
 0x213   :  { %806 = vmatmul.mubr.f32.vlgmr.msra.gmra.mxu1 %v325_v26  ;;  %1403 = vmatprep.subr.msk.mxu1 %vm2665_vm1, %v2625_v59  ;;  %v2668_v26 = vld [vmem:[#allocation25_spill] sm:$0xff]  ;;  %vm2707_vm1 = vcmp.eq.s32.totalorder %v2653_v47, %v1517_v12 }
 0x214   :  { %1323 = vmatpush3.msra.mxu0 %v2666_v33  ;;  %1404 = vmatpush3.msk.msra.mxu1 %vm140_vm3, %v2625_v59  ;;  %vm2675_vm3 = vcmp.eq.s32.totalorder %v1676_v5, %v1517_v12  ;;  %v2698_v5 = vand.u32 4294901760, %v1832_v58 }
 0x215   :  { %1076 = vmatprep.mubr.f32.mxu1 %v2146_v11  ;;  %1324 = vmatprep.subr.mxu0 %v2667_v22 }
 0x216   :  { %1405 = vmatprep.subr.msk.mxu1 %vm155_vm4, %v2625_v59  ;;  %1325 = vmatpush3.msra.mxu0 %v2668_v26  ;;  %vm2678_vm4 = vcmp.eq.s32.totalorder %v1731_v44, %v1517_v12  ;;  %v2710_v44 = vld [vmem:[#allocation15_spill] sm:$0xff] }
 0x217   :  { %1406 = vmatpush3.msk.msra.mxu1 %vm139_vm5, %v2625_v59  ;;  %1326 = vmatprep.subr.mxu0 %v2076_v23  ;;  %vm2681_vm5 = vcmp.eq.s32.totalorder %v1784_v4, %v1517_v12  ;;  %v2711_v45 = vand.u32 4294901760, %v2710_v44  ;;  %v2716_v4 = vand.u32 4294901760, %v2664_v61  ;;  %v2723_v61 = vand.u32 4294901760, %v2105_v24 }
 0x218   :  { %1407 = vmatprep.subr.msk.mxu1 %vm154_vm6, %v2625_v59  ;;  %1327 = vmatpush3.msra.mxu0 %v2089_v63  ;;  %vm2683_vm6 = vcmp.eq.s32.totalorder %v1787_v6, %v1517_v12  ;;  %v2717_v6 = vld [vmem:[#allocation27_spill] sm:$0xff] }
 0x219   :  { %1408 = vmatpush3.msk.msra.mxu1 %vm138_vm7, %v2625_v59  ;;  %1328 = vmatprep.subr.mxu0 %v2105_v24  ;;  %vm2685_vm7 = vcmp.eq.s32.totalorder %v1807_v42, %v1517_v12  ;;  %v2720_v42 = vand.u32 4294901760, %v2668_v26 }
 0x21a   :  { %1409 = vmatprep.subr.msk.mxu1 %vm153_vm8, %v2625_v59  ;;  %1329 = vmatpush3.msra.mxu0 %v2669_v13  ;;  %vm2687_vm8 = vcmp.eq.s32.totalorder %v1848_v10, %v1517_v12 }
 0x21b   :  { %1410 = vmatpush3.msk.msra.mxu1 %vm137_vm9, %v2625_v59  ;;  %698 = vmatmul.mubr.f32.vlgmr.msra.gmra.mxu0 %v2152_v46  ;;  %vm2689_vm9 = vcmp.eq.s32.totalorder %v1868_v49, %v1517_v12  ;;  %v2713_v49 = vld [vmem:[#allocation16_spill] sm:$0xff] }
 0x21c   :  { %1368 = vmatprep.subr.mxu0 %v2671_v15  ;;  %1411 = vmatprep.subr.msk.mxu1 %vm152_vm10, %v2625_v59  ;;  %vm2691_vm10 = vcmp.eq.s32.totalorder %v1871_v53, %v1517_v12  ;;  %v2714_v60 = vand.u32 4294901760, %v2713_v49  ;;  %v2721_v53 = vand.u32 4294901760, %v2076_v23 }
 0x21d   :  { %1369 = vmatpush3.msra.mxu0 %v2672_v16  ;;  %972 = vmatprep.mubr.f32.mxu0 %v2146_v11 }
 0x21e   :  { %1412 = vmatpush3.msk.msra.mxu1 %vm136_vm11, %v2625_v59  ;;  %1370 = vmatprep.subr.mxu0 %v2673_v17  ;;  %vm2693_vm11 = vcmp.eq.s32.totalorder %v1893_v43, %v1517_v12 }
 0x21f   :  { %1413 = vmatprep.subr.msk.mxu1 %vm151_vm12, %v2625_v59  ;;  %1371 = vmatpush3.msra.mxu0 %v2674_v18  ;;  %vm2695_vm12 = vcmp.eq.s32.totalorder %v1915_v48, %v1517_v12 }
 0x220   :  { %1414 = vmatpush3.msk.msra.mxu1 %vm2675_vm3, %v2625_v59  ;;  %1372 = vmatprep.subr.mxu0 %v2676_v19  ;;  %vm2709_vm3 = vcmp.eq.s32.totalorder %v2656_v3, %v1517_v12 }
 0x221   :  { %1415 = vmatprep.subr.msk.mxu1 %vm150_vm14, %v2625_v59  ;;  %1373 = vmatpush3.msra.mxu0 %v2677_v21  ;;  %vm2697_vm14 = vcmp.eq.s32.totalorder %v1937_v52, %v1517_v12 }
 0x222   :  { %1416 = vmatpush3.msk.msra.mxu1 %vm2678_vm4, %v2625_v59  ;;  %1374 = vmatprep.subr.mxu0 %v2679_v27  ;;  %vm2712_vm4 = vcmp.eq.s32.totalorder %v2659_v38, %v1517_v12 }
 0x223   :  { %1417 = vmatprep.subr.msk.mxu1 %vm149_vm0, %v2625_v59  ;;  %1375 = vmatpush3.msra.mxu0 %v2680_v28  ;;  %vm2699_vm0 = vcmp.eq.s32.totalorder %v1940_v7, %v1517_v12 }
 0x224   :  { %1418 = vmatpush3.msk.msra.mxu1 %vm2681_vm5, %v2625_v59  ;;  %1376 = vmatprep.subr.mxu0 %v2682_v30  ;;  %vm2715_vm5 = vcmp.eq.s32.totalorder %v2662_v31, %v1517_v12  ;;  %v2722_v12 = vand.u32 4294901760, %v2089_v63 }
 0x225   :  { %1419 = vmatprep.subr.msk.mxu1 %vm2683_vm6, %v2625_v59  ;;  %1377 = vmatpush3.msra.mxu0 %v2684_v39  ;;  %vm1083_vm6 = vcmask 130048  }
 0x226   :  { %1420 = vmatpush3.msk.msra.mxu1 %vm2685_vm7, %v2625_v59  ;;  %1378 = vmatprep.subr.mxu0 %v2686_v50 }
 0x227   :  { %1421 = vmatprep.subr.msk.mxu1 %vm2687_vm8, %v2625_v59  ;;  %1379 = vmatpush3.msra.mxu0 %v2688_v55 }
 0x228   :  { %1422 = vmatpush3.msk.msra.mxu1 %vm2689_vm9, %v2625_v59  ;;  %1380 = vmatprep.subr.mxu0 %v2690_v57 }
 0x229   :  { %1423 = vmatprep.subr.msk.mxu1 %vm2691_vm10, %v2625_v59  ;;  %1381 = vmatpush3.msra.mxu0 %v2692_v62 }
 0x22a   :  { %1424 = vmatpush3.msk.msra.mxu1 %vm2693_vm11, %v2625_v59  ;;  %1382 = vmatprep.subr.mxu0 %v2694_v0 }
 0x22b   :  { %1425 = vmatprep.subr.msk.mxu1 %vm2695_vm12, %v2625_v59  ;;  %1383 = vmatpush3.msra.mxu0 %v2696_v1 }
 0x22c   :  { %1426 = vmatpush3.msk.msra.mxu1 %vm2697_vm14, %v2625_v59  ;;  %1384 = vmatprep.subr.mxu0 %v2698_v5 }
 0x22d   :  { %1427 = vmatprep.subr.msk.mxu1 %vm2699_vm0, %v2625_v59  ;;  %1385 = vmatpush3.msra.mxu0 %v2700_v8 }
 0x22e   :  { %1428 = vmatpush3.msk.msra.mxu1 %vm2701_vm2, %v2625_v59  ;;  %1386 = vmatprep.subr.mxu0 %v2702_v20 }
 0x22f   :  { %1429 = vmatprep.subr.msk.mxu1 %vm2703_vm13, %v2625_v59  ;;  %1387 = vmatpush3.msra.mxu0 %v2704_v35 }
 0x230   :  { %1430 = vmatpush3.msk.msra.mxu1 %vm2705_vm15, %v2625_v59  ;;  %1388 = vmatprep.subr.mxu0 %v2706_v36 }
 0x231   :  { %1431 = vmatprep.subr.msk.mxu1 %vm2707_vm1, %v2625_v59  ;;  %1389 = vmatpush3.msra.mxu0 %v2708_v37 }
 0x232   :  { %1432 = vmatpush3.msk.msra.mxu1 %vm2709_vm3, %v2625_v59  ;;  %1390 = vmatprep.subr.mxu0 %v2711_v45 }
 0x233   :  { %1433 = vmatprep.subr.msk.mxu1 %vm2712_vm4, %v2625_v59  ;;  %1391 = vmatpush3.msra.mxu0 %v2714_v60 }
 0x234   :  { %1434 = vmatpush3.msk.msra.mxu1 %vm2715_vm5, %v2625_v59  ;;  %1392 = vmatprep.subr.mxu0 %v2716_v4 }
 0x235   :  { %1078 = vmatmul.mubr.f32.vlgmr.msra.gmra.mxu1 %v2717_v6  ;;  %1393 = vmatpush3.msra.mxu0 %v2718_v25 }
 0x236   :  { %1394 = vmatprep.subr.mxu0 %v2719_v29 }
 0x237   :  { %1395 = vmatpush3.msra.mxu0 %v2720_v42 }
 0x238   :  { %1396 = vmatprep.subr.mxu0 %v2721_v53 }
 0x239   :  { %1397 = vmatpush3.msra.mxu0 %v2722_v12 }
 0x23a   :  { %1398 = vmatprep.subr.mxu0 %v2723_v61 }
 0x23b   :  { %1399 = vmatpush3.msra.mxu0 %v2724_v54 }
 0x23c   :  { %974 = vmatmul.mubr.f32.vlgmr.msra.gmra.mxu0 %v2717_v6 }
 0x2b2   :  { %v1295_v10 = vpop.f32.mrf.mxu1 }
 0x2b4   :  { %v1296_v2 = vpop.f32.mrf.mxu1 }
 0x2b5   :  { %v1297_v59 = vadd.f32 %v1296_v2, %v1295_v10 }
 0x2ba   :  { %v1260_v58 = vpop.f32.mrf.mxu0 }
 0x2bc   :  { %v1261_v43 = vpop.f32.mrf.mxu0 }
 0x2bd   :  { %v1262_v23 = vadd.f32 %v1261_v43, %v1260_v58 }
 0x2bf   :  { %v562_v46 = vadd.f32 %v1297_v59, %v1262_v23 }
 0x2d3   :  { %v1365_v52 = vpop.f32.mrf.mxu1 }
 0x2d5   :  { %v1366_v63 = vpop.f32.mrf.mxu1 }
 0x2d6   :  { %v1367_v51 = vadd.f32 %v1366_v63, %v1365_v52 }
 0x2db   :  { %v1330_v48 = vpop.f32.mrf.mxu0 }
 0x2dd   :  { %v1331_v7 = vpop.f32.mrf.mxu0 }
 0x2de   :  { %v1332_v11 = vadd.f32 %v1331_v7, %v1330_v48 }
 0x2e0   :  { %v700_v24 = vadd.f32 %v1332_v11, %v562_v46 }
 0x2e2   :  { %v808_v40 = vadd.f32 %v1367_v51, %v700_v24 }
 0x2f5   :  { %v1435_v34 = vpop.f32.mrf.mxu1 }
 0x2f7   :  { %v1436_v9 = vpop.f32.mrf.mxu1 }
 0x2f8   :  { %v1437_v41 = vadd.f32 %v1436_v9, %v1435_v34 }
 0x2fc   :  { %v1400_v32 = vpop.f32.mrf.mxu0 }
 0x2fe   :  { %v1401_v56 = vpop.f32.mrf.mxu0 }
 0x2ff   :  { %v1402_v47 = vadd.f32 %v1401_v56, %v1400_v32 }
 0x301   :  { %v976_v3 = vadd.f32 %v1402_v47, %v808_v40 }
 0x303   :  { %v1080_v33 = vadd.f32 %v1437_v41, %v976_v3 }
 0x305   :  { %1084 = vst.msk [vmem:[#allocation5] sm:$0xff] %vm1083_vm6, %v1080_v33 }
 0x306   :  { %1477 = shalt.err (!%p1474_p9)
}
 0x307   :  { %1094 = dma.vmem_to_hbm [thread:$0]  %s1092_s15, 128, %s2514_s1, [#allocation4]  }
 0x308   :  { %1488 = dma.done.wait [#allocation4], 128  }
 0x309   :  { %1489 = vsyncadd [#allocation4], 4294967168 }
 0x30a   :  { %1098 = vsyncpa [#allocation3], 1 }
 0x30b   :  { %1099 = vsyncpa [#allocation4], 1 }

// kernel: tpu_custom_call.1
= control target key start
LH: loop header
LB: loop body
LE: loop exit
PB: predicated region body
PF: predicated region fallthrough
CT: control target
= control target key end

     0   :  { %6 = vsyncpa [#allocation3], 0  ;;  %s304_s0 = inlined_call_operand.hbm [shape: f32[8,16,16], index: 0, kind: input, shape index: {}]   ;;  %s305_s1 = inlined_call_operand.hbm [shape: f32[8,16], index: 1, kind: output, shape index: {}]  }
   0x1   :  { %7 = vsyncpa [#allocation4], 0  ;;  %s259_s6 = smov [#allocation2]  }
   0x2   :  { %s13_s7 = sshll.u32 %s259_s6, 4  ;;  %s14_s7 = int_to_ptr.vmem [resolvable:$true] %s13_s7 }
   0x3   :  { %s223_s8 = scalar_lea.vmem %s14_s7, 2048  ;;  %p228_p1 = scmp.lt.s32.totalorder %s14_s7, %s14_s7 }
   0x4   :  { %p224_p0 = scmp.ne.s32.totalorder %s14_s7, %s223_s8  ;;  %p229_p2 = scmp.lt.s32.totalorder %s223_s8, %s223_s8 }
   0x6   :  { %p230_p3 = por %p229_p2, %p228_p1 }
   0x8   :  { %p231_p4 = pnand %p230_p3, %p224_p0 }
   0xa   :  { %234 = shalt.err (!%p231_p4)
}
   0xb   :  { %s260_s9 = smov 128   ;;  %s261_s10 = smov 8  }
   0xc   :  { %19 = dma.hbm_to_vmem [thread:$0]  %s304_s0, 2048, %s14_s7, [#allocation3], %s260_s9, %s260_s9, %s261_s10  }
   0xd   :  { %255 = dma.done.wait [#allocation3], 2048  }
   0xe   :  { %256 = vsyncadd [#allocation3], 4294965248  ;;  %vm39_vm0 = vcmask 130048   ;;  %v25_v0 = vld [vmem:[#allocation2 + $0x10] sm:$0xff]  ;;  %v23_v1 = vld [vmem:[#allocation2] sm:$0xff]  ;;  %v104_v36 = vlaneseq  ;;  %vm115_vm1 = vcmask 130112  }
   0xf   :  { %v26_v2 = vld [vmem:[#allocation2 + $0x18] sm:$0xff]  ;;  %v46_v3 = vsel %vm39_vm0, %v25_v0, -inf  ;;  %v40_v4 = vsel %vm39_vm0, %v23_v1, -inf  ;;  %v24_v5 = vld [vmem:[#allocation2 + $0x8] sm:$0xff]  ;;  %v27_v9 = vld [vmem:[#allocation2 + $0x20] sm:$0xff]  ;;  %vm180_vm2 = vcmask 1041409  }
  0x10   :  { %47 = vmax.xlane.f32.xlu1 %v46_v3  ;;  %41 = vmax.xlane.f32.xlu0 %v40_v4  ;;  %v49_v6 = vsel %vm39_vm0, %v26_v2, -inf  ;;  %v43_v7 = vsel %vm39_vm0, %v24_v5, -inf  ;;  %v28_v8 = vld [vmem:[#allocation2 + $0x28] sm:$0xff]  ;;  %v52_v11 = vsel %vm39_vm0, %v27_v9, -inf  ;;  %v30_v12 = vld [vmem:[#allocation2 + $0x38] sm:$0xff]  ;;  %v29_v13 = vld [vmem:[#allocation2 + $0x30] sm:$0xff] }
  0x11   :  { %v55_v10 = vsel %vm39_vm0, %v28_v8, -inf  ;;  %v61_v14 = vsel %vm39_vm0, %v30_v12, -inf  ;;  %v58_v15 = vsel %vm39_vm0, %v29_v13, -inf  ;;  %v32_v16 = vld [vmem:[#allocation2 + $0x48] sm:$0xff]  ;;  %v31_v17 = vld [vmem:[#allocation2 + $0x40] sm:$0xff]  ;;  %v34_v20 = vld [vmem:[#allocation2 + $0x58] sm:$0xff] }
  0x12   :  { %v67_v18 = vsel %vm39_vm0, %v32_v16, -inf  ;;  %v64_v19 = vsel %vm39_vm0, %v31_v17, -inf  ;;  %v33_v21 = vld [vmem:[#allocation2 + $0x50] sm:$0xff]  ;;  %v73_v22 = vsel %vm39_vm0, %v34_v20, -inf  ;;  %v36_v24 = vld [vmem:[#allocation2 + $0x68] sm:$0xff]  ;;  %v35_v25 = vld [vmem:[#allocation2 + $0x60] sm:$0xff] }
  0x13   :  { %v70_v23 = vsel %vm39_vm0, %v33_v21, -inf  ;;  %v79_v26 = vsel %vm39_vm0, %v36_v24, -inf  ;;  %v76_v27 = vsel %vm39_vm0, %v35_v25, -inf  ;;  %v38_v28 = vld [vmem:[#allocation2 + $0x78] sm:$0xff]  ;;  %v37_v29 = vld [vmem:[#allocation2 + $0x70] sm:$0xff]  ;;  %v105_v39 = vand.u32 127, %v104_v36 }
  0x14   :  { %50 = vmax.xlane.f32.xlu1 %v49_v6  ;;  %44 = vmax.xlane.f32.xlu0 %v43_v7  ;;  %v85_v30 = vsel %vm39_vm0, %v38_v28, -inf  ;;  %v82_v31 = vsel %vm39_vm0, %v37_v29, -inf  ;;  %v107_v43 = vshrl.u32 %v104_v36, 7  ;;  %vm182_vm3 = vcmask 1042434   ;;  %s262_s0 = smov [#allocation5]  }
  0x15   :  { %v110_v40 = vadd.s32 4294967288, %v105_v39  ;;  %vm184_vm4 = vcmask 1043459   ;;  %vm186_vm5 = vcmask 1044484   ;;  %vm188_vm6 = vcmask 1045509   ;;  %s202_s13 = sshll.u32 %s262_s0, 4  ;;  %s203_s13 = int_to_ptr.vmem [resolvable:$true] %s202_s13 }
  0x16   :  { %v108_v47 = vsub.s32 %v105_v39, %v107_v43  ;;  %vm190_vm7 = vcmask 1046534   ;;  %vm192_vm8 = vcmask 1047559   ;;  %s235_s14 = scalar_lea.vmem %s203_s13, 128  ;;  %p240_p6 = scmp.lt.s32.totalorder %s203_s13, %s203_s13 }
  0x17   :  { %v113_v44 = vsub.s32 %v110_v40, %v107_v43  ;;  %p236_p5 = scmp.ne.s32.totalorder %s203_s13, %s235_s14  ;;  %p241_p7 = scmp.lt.s32.totalorder %s235_s14, %s235_s14 }
  0x18   :  { %56 = vmax.xlane.f32.xlu1 %v55_v10  ;;  %53 = vmax.xlane.f32.xlu0 %v52_v11 }
  0x19   :  { %p242_p8 = por %p241_p7, %p240_p6 }
  0x1b   :  { %p243_p9 = pnand %p242_p8, %p236_p5 }
  0x1c   :  { %62 = vmax.xlane.f32.xlu1 %v61_v14  ;;  %59 = vmax.xlane.f32.xlu0 %v58_v15 }
  0x20   :  { %68 = vmax.xlane.f32.xlu1 %v67_v18  ;;  %65 = vmax.xlane.f32.xlu0 %v64_v19 }
  0x24   :  { %74 = vmax.xlane.f32.xlu1 %v73_v22  ;;  %71 = vmax.xlane.f32.xlu0 %v70_v23 }
  0x28   :  { %80 = vmax.xlane.f32.xlu1 %v79_v26  ;;  %77 = vmax.xlane.f32.xlu0 %v76_v27 }
  0x2c   :  { %86 = vmax.xlane.f32.xlu1 %v85_v30  ;;  %83 = vmax.xlane.f32.xlu0 %v82_v31 }
  0x99   :  { %v48_v32 = vpop.xlane.xlu1 %47  ;;  %v42_v33 = vpop.xlane.xlu0 %41 }
  0x9a   :  { %v120_v54 = vrot.slane %v48_v32, %v108_v47  ;;  %v109_v55 = vrot.slane %v42_v33, %v108_v47 }
  0x9d   :  { %v51_v34 = vpop.xlane.xlu1 %50  ;;  %v45_v35 = vpop.xlane.xlu0 %44 }
  0x9e   :  { %v124_v48 = vrot.slane %v51_v34, %v113_v44  ;;  %v114_v49 = vrot.slane %v45_v35, %v113_v44 }
  0xa0   :  { %v125_v60 = vsel %vm115_vm1, %v124_v48, %v120_v54  ;;  %v116_v61 = vsel %vm115_vm1, %v114_v49, %v109_v55 }
  0xa1   :  { %v57_v37 = vpop.xlane.xlu1 %56  ;;  %v54_v38 = vpop.xlane.xlu0 %53  ;;  %v181_v6 = vsel %vm180_vm2, %v125_v60, %v116_v61 }
  0xa2   :  { %v133_v50 = vrot.slane %v57_v37, %v113_v44  ;;  %v129_v51 = vrot.slane %v54_v38, %v108_v47 }
  0xa4   :  { %v134_v0 = vsel %vm115_vm1, %v133_v50, %v129_v51 }
  0xa5   :  { %v63_v41 = vpop.xlane.xlu1 %62  ;;  %v60_v42 = vpop.xlane.xlu0 %59  ;;  %v183_v8 = vsel %vm182_vm3, %v134_v0, %v181_v6 }
  0xa6   :  { %v142_v56 = vrot.slane %v63_v41, %v113_v44  ;;  %v138_v57 = vrot.slane %v60_v42, %v108_v47 }
  0xa8   :  { %v143_v3 = vsel %vm115_vm1, %v142_v56, %v138_v57 }
  0xa9   :  { %v69_v45 = vpop.xlane.xlu1 %68  ;;  %v66_v46 = vpop.xlane.xlu0 %65  ;;  %v185_v10 = vsel %vm184_vm4, %v143_v3, %v183_v8 }
  0xaa   :  { %v151_v58 = vrot.slane %v69_v45, %v113_v44  ;;  %v147_v59 = vrot.slane %v66_v46, %v108_v47 }
  0xac   :  { %v152_v7 = vsel %vm115_vm1, %v151_v58, %v147_v59 }
  0xad   :  { %v75_v52 = vpop.xlane.xlu1 %74  ;;  %v72_v53 = vpop.xlane.xlu0 %71  ;;  %v187_v14 = vsel %vm186_vm5, %v152_v7, %v185_v10 }
  0xae   :  { %v160_v62 = vrot.slane %v75_v52, %v113_v44  ;;  %v156_v63 = vrot.slane %v72_v53, %v108_v47 }
  0xb0   :  { %v161_v9 = vsel %vm115_vm1, %v160_v62, %v156_v63 }
  0xb1   :  { %v81_v1 = vpop.xlane.xlu1 %80  ;;  %v78_v2 = vpop.xlane.xlu0 %77  ;;  %v189_v17 = vsel %vm188_vm6, %v161_v9, %v187_v14 }
  0xb2   :  { %v169_v4 = vrot.slane %v81_v1, %v113_v44  ;;  %v165_v5 = vrot.slane %v78_v2, %v108_v47 }
  0xb4   :  { %v170_v11 = vsel %vm115_vm1, %v169_v4, %v165_v5 }
  0xb5   :  { %v87_v12 = vpop.xlane.xlu1 %86  ;;  %v84_v13 = vpop.xlane.xlu0 %83  ;;  %v191_v19 = vsel %vm190_vm7, %v170_v11, %v189_v17 }
  0xb6   :  { %v178_v15 = vrot.slane %v87_v12, %v113_v44  ;;  %v174_v16 = vrot.slane %v84_v13, %v108_v47 }
  0xb8   :  { %v179_v18 = vsel %vm115_vm1, %v178_v15, %v174_v16 }
  0xb9   :  { %v193_v20 = vsel %vm192_vm8, %v179_v18, %v191_v19 }
  0xba   :  { %195 = vst.msk [vmem:[#allocation5] sm:$0xff] %vm39_vm0, %v193_v20 }
  0xbb   :  { %246 = shalt.err (!%p243_p9)
}
  0xbc   :  { %205 = dma.vmem_to_hbm [thread:$0]  %s203_s13, 128, %s305_s1, [#allocation4]  }
  0xbd   :  { %257 = dma.done.wait [#allocation4], 128  }
  0xbe   :  { %258 = vsyncadd [#allocation4], 4294967168 }
  0xbf   :  { %209 = vsyncpa [#allocation3], 1 }
  0xc0   :  { %210 = vsyncpa [#allocation4], 1 }

</bundles_post_ra>
